<compile_context>
chip_gen: v7x
topology: tpu7x:2x2x1
jax: 0.10.0
libtpu: 0.0.40
codegen_flags: <defaults>
</compile_context>

<pallas_src>
import jax
import jax.numpy as jnp
from jax.experimental import pallas as pl
from jax.experimental.pallas import tpu as pltpu


def transition_kernel(x_ref, sb_ref, w_ref, o_ref):
    # x_ref:  (4, TM, Cin) bf16 — the four 2x2-pool taps for TM output pixels
    # sb_ref: (2, Cin) f32      — row 0: scale = gamma/sqrt(var+eps)
    #                             row 1: bias  = beta - mean*scale
    # w_ref:  (Cin, Cout) bf16  — 1x1 conv weight (transposed), pre-scaled 0.25
    # o_ref:  (TM, Cout) f32
    scale = sb_ref[0:1, :]
    bias = sb_ref[1:2, :]

    def bn_relu_tap(k):
        # up-cast to f32 for the VPU math (v5e has no bf16 VPU; also keeps BN
        # precision), BN affine + ReLU.
        return jnp.maximum(x_ref[k].astype(jnp.float32) * scale + bias, 0.0)

    # 2x2 average pool commuted before the conv: 3 VPU adds (the 0.25 scale is
    # folded into w), then a single MXU matmul on the 4x smaller row block.
    p = bn_relu_tap(0) + bn_relu_tap(1) + bn_relu_tap(2) + bn_relu_tap(3)
    o_ref[...] = jnp.dot(p.astype(jnp.bfloat16), w_ref[...],
                         preferred_element_type=jnp.float32)


def _pick_row_tile(rows, cin, cout, max_tile=1024, tile_budget_bytes=24 << 20):
    """Rows per grid step: multiple of 8, VMEM-bounded, >= 2 grid steps."""
    # Bytes per row resident in the double-buffered pipeline:
    #   x taps (bf16, 2 buffers) + output (f32, 2 buffers).
    per_row = 2 * (4 * cin * 2) + 2 * (cout * 4)
    vmem_cap = max(8, tile_budget_bytes // per_row)
    cap = max(8, min(max_tile, vmem_cap, rows))

    # Prefer the largest multiple of 8 that divides rows and leaves >= 2 grid
    # steps (no padded tail work, and megacore / v7x dual-TC gets sharded work).
    best = None
    for cand in range(8, cap + 1, 8):
        if rows % cand == 0 and rows // cand >= 2:
            best = cand
    if best is not None:
        return best
    if rows > cap:                       # fallback: tail block is padded
        return max(8, (cap // 8) * 8)
    if rows >= 16 and rows % 16 == 0:    # tiny input: still split for 2 TCs
        return rows // 2
    return rows


def transition_forward(x_nchw, gamma, beta, weight, eps=1e-5, max_row_tile=1024):
    """x_nchw: (N, Cin, H, W) f32; weight: (Cout, Cin, 1, 1). Returns NCHW f32."""
    N, Cin, H, W = x_nchw.shape
    Cout = weight.shape[0]
    assert H % 2 == 0 and W % 2 == 0, "AvgPool2d(2) path assumes even H, W"
    Hp, Wp = H // 2, W // 2
    rows = N * Hp * Wp

    # --- Layout: expose the four 2x2-pool taps on a leading axis, flatten
    #     (n, i, j) output pixels into rows, channels last (lane dim). --------
    x_q_f32 = (
        x_nchw.reshape(N, Cin, Hp, 2, Wp, 2)
        .transpose(3, 5, 0, 2, 4, 1)                          # (di, dj, n, i, j, c)
        .reshape(4, rows, Cin)
    )

    # --- BatchNorm2d batch stats as consumers of the SAME transpose: XLA fuses
    #     read(x) -> {s1, s2, bf16(x_q)} into one HBM pass.  Folded into a
    #     per-channel scale/bias (training-mode forward, biased variance). ----
    cnt = 4.0 * rows                                          # == N*H*W
    s1 = jnp.sum(x_q_f32, axis=(0, 1))
    s2 = jnp.sum(x_q_f32 * x_q_f32, axis=(0, 1))
    mean = s1 / cnt
    var = jnp.maximum(s2 / cnt - mean * mean, 0.0)
    scale = gamma * jax.lax.rsqrt(var + eps)                  # (Cin,)
    bias = beta - mean * scale                                # (Cin,)
    sb = jnp.stack([scale, bias], axis=0)                     # (2, Cin), one DMA stream

    x_q = x_q_f32.astype(jnp.bfloat16)                        # halve the dominant HBM read
    # Fold the 2x2 average-pool 1/4 into the weight (valid: conv is linear).
    w_mat = (weight.reshape(Cout, Cin).T * 0.25).astype(jnp.bfloat16)   # (Cin, Cout)

    tm = _pick_row_tile(rows, Cin, Cout, max_row_tile)
    grid = (pl.cdiv(rows, tm),)

    # Explicit VMEM limit: covers the pipelined tiles with headroom, kept under
    # v7x's 64 MiB physical; raises v5e's 16 MiB scoped default when needed.
    est = 2 * (4 * tm * Cin * 2) + 2 * (tm * Cout * 4) + Cin * Cout * 2 + 2 * Cin * 4
    vmem_limit = int(min(max(2 * est + (4 << 20), 16 << 20), 48 << 20))

    out_rows = pl.pallas_call(
        transition_kernel,
        out_shape=jax.ShapeDtypeStruct((rows, Cout), jnp.float32),
        grid_spec=pltpu.PrefetchScalarGridSpec(
            num_scalar_prefetch=0,
            grid=grid,
            in_specs=[
                pl.BlockSpec((4, tm, Cin), lambda i: (0, i, 0)),
                pl.BlockSpec((2, Cin), lambda i: (0, 0)),      # grid-invariant
                pl.BlockSpec((Cin, Cout), lambda i: (0, 0)),   # grid-invariant
            ],
            out_specs=pl.BlockSpec((tm, Cout), lambda i: (i, 0)),
        ),
        compiler_params=pltpu.CompilerParams(
            dimension_semantics=("parallel",),
            vmem_limit_bytes=vmem_limit),
    )(x_q, sb, w_mat)

    # rows -> (N, Hp, Wp, Cout) -> NCHW (kept NCHW for parity with the module;
    # skip this transpose if the consumer accepts NHWC).
    return out_rows.reshape(N, Hp, Wp, Cout).transpose(0, 3, 1, 2)


def transition_reference(x_nchw, gamma, beta, weight, eps=1e-5):
    """Pure-JAX f32 reference mirroring the PyTorch module (conv then pool)."""
    mean = jnp.mean(x_nchw, axis=(0, 2, 3), keepdims=True)
    var = jnp.mean((x_nchw - mean) ** 2, axis=(0, 2, 3), keepdims=True)
    h = (x_nchw - mean) / jnp.sqrt(var + eps)
    h = h * gamma[None, :, None, None] + beta[None, :, None, None]
    h = jnp.maximum(h, 0.0)
    y = jnp.einsum("nchw,oc->nohw", h, weight[:, :, 0, 0])
    N, Co, H, W = y.shape
    return y.reshape(N, Co, H // 2, 2, W // 2, 2).mean(axis=(3, 5))


if __name__ == "__main__":
    # DenseNet-like transition: Cin=256 -> Cout=128, 16x16 spatial, batch 2.
    # Real channel counts keep both lane dims multiples of 128 (lane-dense
    # loads and unmasked stores) while staying small.
    N, Cin, Cout, H, W = 2, 256, 128, 16, 16

    key = jax.random.PRNGKey(0)
    kx, kg, kb, kw = jax.random.split(key, 4)
    x = jax.random.normal(kx, (N, Cin, H, W), dtype=jnp.float32)
    gamma = 1.0 + 0.1 * jax.random.normal(kg, (Cin,), dtype=jnp.float32)
    beta = 0.1 * jax.random.normal(kb, (Cin,), dtype=jnp.float32)
    weight = 0.1 * jax.random.normal(kw, (Cout, Cin, 1, 1), dtype=jnp.float32)

    out = jax.block_until_ready(transition_forward(x, gamma, beta, weight))
    ref = transition_reference(x, gamma, beta, weight)

    assert out.shape == (N, Cout, H // 2, W // 2), out.shape
    # bf16 activations/weights in the kernel -> compare with a bf16-appropriate
    # tolerance against the f32 reference.
    max_err = float(jnp.max(jnp.abs(out - ref)))
    assert jnp.allclose(out, ref, atol=5e-2, rtol=5e-2), f"mismatch, max_err={max_err}"

    print("KERNEL_OK")
</pallas_src>

<mosaic_0001>
module attributes {stable_mosaic.version = 11 : i64} {
  func.func @transition_kernel(%arg0: i32, %arg1: memref<4x64x256xbf16, #tpu.memory_space<vmem>>, %arg2: memref<2x256xf32, #tpu.memory_space<vmem>>, %arg3: memref<256x128xbf16, #tpu.memory_space<vmem>>, %arg4: memref<64x128xf32, #tpu.memory_space<vmem>>) attributes {dimension_semantics = [#tpu.dimension_semantics<parallel>], iteration_bounds = array<i64: 2>, scalar_prefetch = 0 : i64, scratch_operands = 0 : i64, tpu.core_type = #tpu.core_type<tc>, window_params = [{transform_indices = @transform_0, window_bounds = array<i64: 4, 64, 256>}, {pipeline_mode = #tpu.pipeline_mode<synchronous>, transform_indices = @transform_1, window_bounds = array<i64: 2, 256>}, {pipeline_mode = #tpu.pipeline_mode<synchronous>, transform_indices = @transform_2, window_bounds = array<i64: 256, 128>}, {transform_indices = @transform_3, window_bounds = array<i64: 64, 128>}]} {
    %c0 = arith.constant 0 : index
    %c0_0 = arith.constant 0 : index
    %0 = vector.load %arg2[%c0, %c0_0] : memref<2x256xf32, #tpu.memory_space<vmem>>, vector<1x256xf32>
    %c1 = arith.constant 1 : index
    %c0_1 = arith.constant 0 : index
    %1 = vector.load %arg2[%c1, %c0_1] : memref<2x256xf32, #tpu.memory_space<vmem>>, vector<1x256xf32>
    %c0_2 = arith.constant 0 : index
    %c0_3 = arith.constant 0 : index
    %c0_4 = arith.constant 0 : index
    %2 = vector.load %arg1[%c0_2, %c0_3, %c0_4] : memref<4x64x256xbf16, #tpu.memory_space<vmem>>, vector<1x64x256xbf16>
    %3 = vector.shape_cast %2 : vector<1x64x256xbf16> to vector<64x256xbf16>
    %4 = arith.extf %3 : vector<64x256xbf16> to vector<64x256xf32>
    %5 = vector.broadcast %0 : vector<1x256xf32> to vector<64x256xf32>
    %6 = arith.mulf %4, %5 : vector<64x256xf32>
    %7 = vector.broadcast %1 : vector<1x256xf32> to vector<64x256xf32>
    %8 = arith.addf %6, %7 : vector<64x256xf32>
    %cst = arith.constant 0.000000e+00 : f32
    %9 = vector.broadcast %cst : f32 to vector<64x256xf32>
    %10 = arith.maximumf %8, %9 : vector<64x256xf32>
    %c1_5 = arith.constant 1 : index
    %c0_6 = arith.constant 0 : index
    %c0_7 = arith.constant 0 : index
    %11 = vector.load %arg1[%c1_5, %c0_6, %c0_7] : memref<4x64x256xbf16, #tpu.memory_space<vmem>>, vector<1x64x256xbf16>
    %12 = vector.shape_cast %11 : vector<1x64x256xbf16> to vector<64x256xbf16>
    %13 = arith.extf %12 : vector<64x256xbf16> to vector<64x256xf32>
    %14 = vector.broadcast %0 : vector<1x256xf32> to vector<64x256xf32>
    %15 = arith.mulf %13, %14 : vector<64x256xf32>
    %16 = vector.broadcast %1 : vector<1x256xf32> to vector<64x256xf32>
    %17 = arith.addf %15, %16 : vector<64x256xf32>
    %cst_8 = arith.constant 0.000000e+00 : f32
    %18 = vector.broadcast %cst_8 : f32 to vector<64x256xf32>
    %19 = arith.maximumf %17, %18 : vector<64x256xf32>
    %20 = arith.addf %10, %19 : vector<64x256xf32>
    %c2 = arith.constant 2 : index
    %c0_9 = arith.constant 0 : index
    %c0_10 = arith.constant 0 : index
    %21 = vector.load %arg1[%c2, %c0_9, %c0_10] : memref<4x64x256xbf16, #tpu.memory_space<vmem>>, vector<1x64x256xbf16>
    %22 = vector.shape_cast %21 : vector<1x64x256xbf16> to vector<64x256xbf16>
    %23 = arith.extf %22 : vector<64x256xbf16> to vector<64x256xf32>
    %24 = vector.broadcast %0 : vector<1x256xf32> to vector<64x256xf32>
    %25 = arith.mulf %23, %24 : vector<64x256xf32>
    %26 = vector.broadcast %1 : vector<1x256xf32> to vector<64x256xf32>
    %27 = arith.addf %25, %26 : vector<64x256xf32>
    %cst_11 = arith.constant 0.000000e+00 : f32
    %28 = vector.broadcast %cst_11 : f32 to vector<64x256xf32>
    %29 = arith.maximumf %27, %28 : vector<64x256xf32>
    %30 = arith.addf %20, %29 : vector<64x256xf32>
    %c3 = arith.constant 3 : index
    %c0_12 = arith.constant 0 : index
    %c0_13 = arith.constant 0 : index
    %31 = vector.load %arg1[%c3, %c0_12, %c0_13] : memref<4x64x256xbf16, #tpu.memory_space<vmem>>, vector<1x64x256xbf16>
    %32 = vector.shape_cast %31 : vector<1x64x256xbf16> to vector<64x256xbf16>
    %33 = arith.extf %32 : vector<64x256xbf16> to vector<64x256xf32>
    %34 = vector.broadcast %0 : vector<1x256xf32> to vector<64x256xf32>
    %35 = arith.mulf %33, %34 : vector<64x256xf32>
    %36 = vector.broadcast %1 : vector<1x256xf32> to vector<64x256xf32>
    %37 = arith.addf %35, %36 : vector<64x256xf32>
    %cst_14 = arith.constant 0.000000e+00 : f32
    %38 = vector.broadcast %cst_14 : f32 to vector<64x256xf32>
    %39 = arith.maximumf %37, %38 : vector<64x256xf32>
    %40 = arith.addf %30, %39 : vector<64x256xf32>
    %41 = arith.truncf %40 : vector<64x256xf32> to vector<64x256xbf16>
    %c0_15 = arith.constant 0 : index
    %c0_16 = arith.constant 0 : index
    %42 = vector.load %arg3[%c0_15, %c0_16] : memref<256x128xbf16, #tpu.memory_space<vmem>>, vector<256x128xbf16>
    %cst_17 = arith.constant dense<0.000000e+00> : vector<64x128xf32>
    %43 = tpu.matmul %41, %42, %cst_17 {dimension_numbers = #tpu.dot_dimension_numbers<[1], [0], [0], [1], [0, 0, 1, 1], [], []>} : vector<64x256xbf16>, vector<256x128xbf16>, vector<64x128xf32> -> vector<64x128xf32>
    %c0_18 = arith.constant 0 : index
    %c0_19 = arith.constant 0 : index
    %44 = vector.load %arg4[%c0_18, %c0_19] : memref<64x128xf32, #tpu.memory_space<vmem>>, vector<64x128xf32>
    tpu.vector_store %arg4[%c0_18, %c0_19], %43 {strides = array<i32>} : memref<64x128xf32, #tpu.memory_space<vmem>>, vector<64x128xf32>,
    return
  }
  func.func @transform_0(%arg0: i32) -> (i32, i32, i32) {
    %c0_i32 = arith.constant 0 : i32
    %c0_i32_0 = arith.constant 0 : i32
    %c0_i32_1 = arith.constant 0 : i32
    return %c0_i32, %arg0, %c0_i32_0 : i32, i32, i32
  }
  func.func @transform_1(%arg0: i32) -> (i32, i32) {
    %c0_i32 = arith.constant 0 : i32
    %c0_i32_0 = arith.constant 0 : i32
    %c0_i32_1 = arith.constant 0 : i32
    return %c0_i32, %c0_i32_0 : i32, i32
  }
  func.func @transform_2(%arg0: i32) -> (i32, i32) {
    %c0_i32 = arith.constant 0 : i32
    %c0_i32_0 = arith.constant 0 : i32
    %c0_i32_1 = arith.constant 0 : i32
    return %c0_i32, %c0_i32_0 : i32, i32
  }
  func.func @transform_3(%arg0: i32) -> (i32, i32) {
    %c0_i32 = arith.constant 0 : i32
    %c0_i32_0 = arith.constant 0 : i32
    return %arg0, %c0_i32 : i32, i32
  }
}

</mosaic_0001>

<bundles_post_ra>
// kernel: tpu_custom_call.1
= control target key start
LH: loop header
LB: loop body
LE: loop exit
PB: predicated region body
PF: predicated region fallthrough
CT: control target
= control target key end

     0   :  { %8 = vsyncpa [#allocation3], 0  ;;  %s1850_s0 = inlined_call_operand.hbm [shape: bf16[4,128,256], index: 0, kind: input, shape index: {}]   ;;  %s1851_s1 = inlined_call_operand.hbm [shape: f32[2,256], index: 1, kind: input, shape index: {}]   ;;  %s1852_s2 = inlined_call_operand.hbm [shape: bf16[256,128], index: 2, kind: input, shape index: {}]   ;;  %s1853_s3 = inlined_call_operand.hbm [shape: f32[128,128], index: 3, kind: output, shape index: {}]  }
   0x1   :  { %10 = vsyncpa [#allocation3 + $0x1], 0 }
   0x2   :  { %11 = vsyncpa [#allocation6], 0 }
   0x3   :  { %12 = vsyncpa [#allocation4], 0 }
   0x4   :  { %14 = vsyncpa [#allocation4 + $0x1], 0  ;;  %s1298_s12 = smov 0   ;;  %s1300_s13 = smov 0  }
   0x5   :  { %s1302_s14 = smov 0   ;;  %s1304_s15 = smov 0  }
   0x6 LB: > { %s1319_s16 = sadd.s32 4294967295, %s1264_s15   ;;  %s924_s17 = sadd.s32 4294967294, %s1264_s15   ;;  %s1264_s15 = sphi %s1304_s15, %s1875_s15   ;;  %s1260_s14 = sphi %s1302_s14, %s1874_s14   ;;  %s1256_s13 = sphi %s1300_s13, %s1873_s13   ;;  %s1252_s12 = sphi %s1298_s12, %s1872_s12  }
   0x7   : > { %s1323_s18 = sadd.s32 1, %s1264_s15   ;;  %s27_s19 = sadd.s32 1, %s1260_s14 }
   0x8   : > { %s24_s20 = ssub.s32 %s1264_s15, %s1323_s18  ;;  %p34_p0 = scmp.ne.s32.totalorder %s1260_s14, %s1256_s13 }
   0x9   : > { %p25_p1 = scmp.eq.s32.totalorder %s24_s20, 0  ;;  %p35_p2 = scmp.eq.s32.totalorder %s1264_s15, 0 }
   0xa   : > { %p40_p3 = scmp.ne.s32.totalorder %s1256_s13, %s1252_s12  ;;  %p1854_p4 = scmp.eq.s32.totalorder %s1319_s16, 0 }
   0xb   : > { %s1335_s21 = scalar_select %p25_p1, %s1260_s14, %s27_s19  }
   0xc   : > { %p1337_p5 = por %p35_p2, %p34_p0  ;;  %p1343_p6 = por %p1854_p4, %p40_p3 }
   0xd   : > { %p106_p7 = scmp.eq.s32.totalorder %s1319_s16, 1  ;;  %p112_p8 = scmp.eq.s32.totalorder %s924_s17, 1 }
   0xe   : > { %s1859_s22 = scalar_select %p1337_p5, 1, 0 }
   0xf   : > { %s1860_s23 = scalar_select %p1343_p6, 1, 0 }
  0x10   : > { %p925_p9 = scmp.ge.s32.totalorder %s1264_s15, 1  ;;  %p119_p10 = scmp.lt.s32.totalorder %s1264_s15, 3 }
  0x11   : > { %p1350_p11 = por %p106_p7, %p34_p0  ;;  %p1354_p12 = por %p112_p8, %p40_p3 }
  0x12   : > { %p1358_p13 = pnand %p925_p9, %p119_p10  ;;  %s1266_s27 = smov [#allocation5]  }
  0x13   : > { %s1861_s24 = scalar_select %p1350_p11, 1, 0 }
  0x14   : > { %s1862_s25 = scalar_select %p1354_p12, 1, 0 }
  0x15   : > { %s1863_s26 = scalar_select %p1358_p13, 1, 0 }
  0x16   : > { %p1063_p1 = pneg %p1358_p13  ;;  %s132_s28 = sshll.u32 %s1266_s27, 4  ;;  %s133_s28 = int_to_ptr.vmem [resolvable:$true] %s132_s28 }
  0x17   : > { %s1267_s29 = smov [#allocation7]   ;;  %s1138_s7 = scalar_lea.hbm %s1851_s1, 64 }
  0x18   : > { %s142_s30 = sshll.u32 %s1267_s29, 4  ;;  %p1366_p0 = pnand %p1063_p1, %p1854_p4  ;;  %s1370_s30 = int_to_ptr.vmem [resolvable:$true] %s142_s30 }
  0x19   : > { %p1139_p2 = scmp.ne.s32.totalorder %s1851_s1, %s1138_s7  ;;  %p1145_p9 = scmp.lt.u32.totalorder %s1138_s7, %s1851_s1 }
  0x1a   : > { %p1140_p3 = pneg %p1366_p0 }
  0x1c   : > { %p1141_p7 = pnand %p1140_p3, %p1139_p2 }
  0x1e   : > { %p1142_p8 = pneg %p1141_p7 }
  0x20   : > { %p1147_p10 = pnand %p1145_p9, %p1142_p8 }
  0x22   : > { %1150 = shalt.err (!%p1147_p10)
}
  0x23   : > { %s1151_s17 = scalar_lea.vmem %s133_s28, 64  ;;  %p1159_p11 = scmp.lt.s32.totalorder %s133_s28, %s133_s28 }
  0x24   : > { %p1152_p1 = scmp.ne.s32.totalorder %s133_s28, %s1151_s17  ;;  %p1160_p6 = scmp.lt.s32.totalorder %s1151_s17, %s1151_s17 }
  0x26   : > { %p1154_p4 = pnand %p1152_p1, %p1140_p3  ;;  %p1161_p13 = por %p1160_p6, %p1159_p11 }
  0x28   : > { %p1155_p12 = pneg %p1154_p4 }
  0x2a   : > { %p1162_p5 = pnand %p1161_p13, %p1155_p12 }
  0x2c   : > { %1165 = shalt.err (!%p1162_p5)
}
  0x2d   : > { %1066 = dma.hbm_to_vmem [thread:$0]  (!%p1366_p0), %s1851_s1, 64, %s133_s28, [#allocation6]  }
  0x2e   : > { %s1166_s5 = scalar_lea.hbm %s1852_s2, 2048 }
  0x2f   : > { %p1167_p4 = scmp.ne.s32.totalorder %s1852_s2, %s1166_s5  ;;  %p1173_p5 = scmp.lt.u32.totalorder %s1166_s5, %s1852_s2 }
  0x31   : > { %p1169_p6 = pnand %p1167_p4, %p1140_p3 }
  0x33   : > { %p1170_p11 = pneg %p1169_p6 }
  0x35   : > { %p1175_p12 = pnand %p1173_p5, %p1170_p11 }
  0x37   : > { %1178 = shalt.err (!%p1175_p12)
}
  0x38   : > { %s1179_s28 = scalar_lea.vmem %s1370_s30, 2048  ;;  %p1187_p8 = scmp.lt.s32.totalorder %s1370_s30, %s1370_s30 }
  0x39   : > { %p1180_p13 = scmp.ne.s32.totalorder %s1370_s30, %s1179_s28  ;;  %p1188_p9 = scmp.lt.s32.totalorder %s1179_s28, %s1179_s28 }
  0x3b   : > { %p1182_p2 = pnand %p1180_p13, %p1140_p3  ;;  %p1189_p10 = por %p1188_p9, %p1187_p8 }
  0x3d   : > { %p1183_p7 = pneg %p1182_p2 }
  0x3f   : > { %p1190_p1 = pnand %p1189_p10, %p1183_p7 }
  0x41   : > { %1193 = shalt.err (!%p1190_p1)
}
  0x42   : > { %s1268_s10 = smov 64   ;;  %s1269_s11 = smov 4  }
  0x43   : > { %1069 = dma.hbm_to_vmem [thread:$0]  (!%p1366_p0), %s1852_s2, 2048, %s1370_s30, [#allocation6], %s1268_s10, %s1268_s10, %s1269_s11  }
  0x44   : > { %p928_p4 = scmp.ge.s32.totalorder %s1264_s15, 2 }
  0x46   : > { %152 = sbr.rel (%p928_p4) target bundleno = 91 (0x5b), region = 24 }
  0x4d   : > { %s156_s20 = sand.u32 1, %s1260_s14   ;;  %s986_s4 = sshll.u32 %s1264_s15, 10 }
  0x4e   : > { %s929_s27 = sshll.u32 %s156_s20, 8  ;;  %p1865_p3 = scmp.ne.s32.totalorder %s1859_s22, 0 }
  0x4f   : > { %s167_s6 = scalar_lea.hbm %s1850_s0, %s986_s4  ;;  %s160_s8 = scalar_lea.vmem [#allocation2], %s929_s27 }
  0x50   : > { %s1048_s29 = scalar_select %p1865_p3, [#allocation0], [#allocation11] }
  0x51   : > { %s180_s9 = sshll.u32 %s160_s8, 4  ;;  %s1270_s28 = smov 2048   ;;  %s181_s9 = int_to_ptr.vmem [resolvable:$true] %s180_s9 }
  0x52   : > { %s172_s7 = sld [smem:[%s1048_s29]]   ;;  %s1271_s10 = smov 1024  }
  0x53   : > { %1049 = sst [smem:[#allocation10]] (%p1865_p3), %s1270_s28  ;;  %s1272_s11 = smov 8  }
  0x54   : > { %1050 = sst [smem:[#allocation10 + $0x1]] (%p1865_p3), %s1271_s10  ;;  %s1273_s17 = smov 128  }
  0x55   : > { %1051 = sst [smem:[#allocation10 + $0x2]] (%p1865_p3), %s1272_s11  ;;  %s157_s4 = scalar_lea.sflag [#allocation3], %s156_s20 }
  0x56   : > { %1052 = sst [smem:[#allocation10 + $0x3]] (%p1865_p3), %s1273_s17  ;;  %s1274_s29 = smov [#allocation9]  }
  0x57   : > { %1053 = sst [smem:[#allocation10 + $0x4]] (%p1865_p3), %s1273_s17 }
  0x58   : > { %s933_s19 = sshll.u32 %s172_s7, 26  ;;  %1054 = sst [smem:[#allocation10 + $0x5]] (%p1865_p3), %s1272_s11 }
  0x59   : > { %s934_s27 = sadd.s32 134217728, %s933_s19 }
  0x5a   : > { %1055 = dma.general (%p1865_p3), %s167_s6, 4096, %s181_s9, %s157_s4, %s1274_s29, [#allocation10], %s934_s27, 0  }
  0x5b PF: > { %p1866_p0 = scmp.ne.s32.totalorder %s1863_s26, 0 }
  0x5c   : > { %s1446_s5 = sand.u32 (!%p1866_p0), 1, %s1256_s13   ;;  %p1867_p6 = scmp.ne.s32.totalorder (!%p1866_p0), %s1860_s23, 0 }
  0x5d   : > { %205 = sbr.rel (%p1866_p0) target bundleno = 427 (0x1ab), region = 32  ;;  %s936_s30 = sshll.u32 (!%p1866_p0), %s1446_s5, 8 }
  0x5e   : > { %s208_s8 = scalar_lea.sflag (!%p1866_p0), [#allocation3], %s1446_s5  ;;  %s1450_s7 = scalar_lea.vmem (!%p1866_p0), [#allocation2], %s936_s30 }
  0x64   : > { %1239 = dma.done.wait (%p1867_p6), %s208_s8, 4096  }
  0x65   : > { %1241 = vsyncadd (%p1867_p6), %s208_s8, 4294963200  ;;  %p1868_p11 = scmp.eq.s32.totalorder %s1319_s16, 0 }
  0x67   : > { %1243 = dma.done.wait (%p1868_p11), [#allocation6], 2112   ;;  %p1869_p5 = pmov %p1868_p11 }
  0x68   : > { %v1122_v0 = vld [vmem:[#allocation7 + $0x40] sm:$0xff]   ;;  %v1124_v2 = vld [vmem:[#allocation7 + $0x48] sm:$0xff]   ;;  %v1126_v4 = vld [vmem:[#allocation7 + $0x50] sm:$0xff]   ;;  %v273_v5 = vlaneseq  ;;  %s939_s22 = sshll.u32 %s1446_s5, 6  ;;  %s987_s20 = sshll.u32 %s1319_s16, 10 }
  0x69   : > { %1245 = vsyncadd (%p1869_p5), [#allocation6], 4294965184  ;;  %v1123_v1 = vld [vmem:[#allocation7] sm:$0xff]   ;;  %988 = vmatprep.subr.bf16.mxu0 %v1122_v0  ;;  %1028 = vmatprep.subr.bf16.mxu1 %v1122_v0  ;;  %v1125_v3 = vld [vmem:[#allocation7 + $0x8] sm:$0xff]   ;;  %s1789_s23 = scalar_lea.vmem [#allocation8], %s939_s22  ;;  %s1804_s28 = scalar_lea.hbm %s1853_s3, %s987_s20 }
  0x6a   : > { %989 = vmatpush3.bf16.msra.mxu0 %v1123_v1  ;;  %1036 = vmatpush3.bf16.msra.mxu1 %v1123_v1  ;;  %v1127_v6 = vld [vmem:[#allocation7 + $0x10] sm:$0xff]   ;;  %v1128_v7 = vld [vmem:[#allocation7 + $0x58] sm:$0xff]   ;;  %v274_v8 = vshrl.u32 %v273_v5, 7  ;;  %v1130_v10 = vld [vmem:[#allocation7 + $0x60] sm:$0xff]   ;;  %s832_s26 = sshll.u32 %s1789_s23, 4  ;;  %s819_s10 = scalar_lea.sflag [#allocation4], %s1446_s5  ;;  %s1799_s26 = int_to_ptr.vmem [resolvable:$true] %s832_s26 }
  0x6b   : > { %990 = vmatprep.subr.bf16.mxu0 %v1124_v2  ;;  %1029 = vmatprep.subr.bf16.mxu1 %v1124_v2  ;;  %v1129_v9 = vld [vmem:[#allocation7 + $0x18] sm:$0xff]   ;;  %v1131_v13 = vld [vmem:[#allocation7 + $0x20] sm:$0xff]   ;;  %v1132_v14 = vld [vmem:[#allocation7 + $0x68] sm:$0xff]   ;;  %s1194_s11 = scalar_lea.vmem %s1799_s26, 1024  ;;  %p1870_p13 = scmp.ne.s32.totalorder %s1861_s24, 0 }
  0x6c   : > { %v275_v11 = vsub.s32 0, %v274_v8  ;;  %v279_v12 = vsub.s32 1, %v274_v8  ;;  %v245_v15 = vld [vmem:[#allocation5] ss:$2 sm:$0x3]  ;;  %v1464_v18 = vld [vmem:[%s1450_s7 + $0x8] sm:$0xff]  ;;  %p1195_p12 = scmp.ne.s32.totalorder %s1799_s26, %s1194_s11 }
  0x6d   : > { %v247_v16 = vld [vmem:[#allocation5 + $0x1] ss:$2 sm:$0x3]  ;;  %v258_v26 = vunpack.c.l.bf16 %v1464_v18  ;;  %v259_v27 = vunpack.c.h.bf16 %v1464_v18  ;;  %v1482_v28 = vld [vmem:[%s1450_s7 + $0x48] sm:$0xff]  ;;  %v1134_v37 = vld [vmem:[#allocation7 + $0x70] sm:$0xff]   ;;  %s1275_s16 = smov [#allocation8]  }
  0x6e   : > { %991 = vmatpush3.bf16.msra.mxu0 %v1125_v3  ;;  %1037 = vmatpush3.bf16.msra.mxu1 %v1125_v3  ;;  %v1461_v17 = vld [vmem:[%s1450_s7] sm:$0xff]  ;;  %v1466_v19 = vrot.slane %v245_v15, %v275_v11  ;;  %v1468_v20 = vrot.slane %v245_v15, %v279_v12  ;;  %v1470_v21 = vrot.slane %v247_v16, %v275_v11  ;;  %v1488_v30 = vld [vmem:[%s1450_s7 + $0x88] sm:$0xff]  ;;  %v353_v34 = vunpack.c.l.bf16 %v1482_v28  ;;  %v1135_v51 = vld [vmem:[#allocation7 + $0x30] sm:$0xff]   ;;  %p1196_p2 = pnand %p1195_p12, %p1870_p13  ;;  %s1198_s17 = sshll.u32 %s1275_s16, 4  ;;  %s1199_s17 = int_to_ptr.vmem [resolvable:$false] %s1198_s17 }
  0x6f   : > { %992 = vmatprep.subr.bf16.mxu0 %v1126_v4  ;;  %1030 = vmatprep.subr.bf16.mxu1 %v1126_v4  ;;  %v1472_v22 = vrot.slane %v247_v16, %v279_v12  ;;  %v1475_v23 = vld [vmem:[%s1450_s7 + $0x40] sm:$0xff]  ;;  %v256_v24 = vunpack.c.l.bf16 %v1461_v17  ;;  %v257_v25 = vunpack.c.h.bf16 %v1461_v17  ;;  %v1133_v31 = vld [vmem:[#allocation7 + $0x28] sm:$0xff]   ;;  %v354_v35 = vunpack.c.h.bf16 %v1482_v28  ;;  %s1200_s19 = scalar_lea.vmem %s1199_s17, 2048  ;;  %p1201_p8 = scmp.lt.s32.totalorder %s1799_s26, %s1199_s17 }
  0x70   : > { %v1485_v29 = vld [vmem:[%s1450_s7 + $0x80] sm:$0xff]  ;;  %v351_v32 = vunpack.c.l.bf16 %v1475_v23  ;;  %v352_v33 = vunpack.c.h.bf16 %v1475_v23  ;;  %v286_v39 = vmul.f32 %v1468_v20, %v259_v27  ;;  %v442_v44 = vunpack.c.l.bf16 %v1488_v30  ;;  %v1506_v46 = vld [vmem:[%s1450_s7 + $0xc8] sm:$0xff]  ;;  %p1197_p7 = pneg %p1196_p2  ;;  %p1202_p9 = scmp.lt.s32.totalorder %s1200_s19, %s1194_s11 }
  0x71   : > { %v1495_v36 = vld [vmem:[%s1450_s7 + $0xc0] sm:$0xff]  ;;  %v284_v38 = vmul.f32 %v1468_v20, %v257_v25  ;;  %v440_v40 = vunpack.c.l.bf16 %v1485_v29  ;;  %v441_v41 = vunpack.c.h.bf16 %v1485_v29  ;;  %v370_v43 = vmul.f32 %v354_v35, %v1468_v20  ;;  %v1524_v2 = vld [vmem:[%s1450_s7 + $0x28] sm:$0xff] }
  0x72   : > { %993 = vmatpush3.bf16.msra.mxu0 %v1127_v6  ;;  %1038 = vmatpush3.bf16.msra.mxu1 %v1127_v6  ;;  %v368_v42 = vmul.f32 %v352_v33, %v1468_v20  ;;  %v443_v45 = vunpack.c.h.bf16 %v1488_v30  ;;  %v313_v48 = vadd.f32 %v1472_v22, %v286_v39  ;;  %v529_v50 = vunpack.c.l.bf16 %v1495_v36  ;;  %v1517_v56 = vld [vmem:[%s1450_s7 + $0x20] sm:$0xff]  ;;  %v1538_v25 = vld [vmem:[%s1450_s7 + $0x68] sm:$0xff]  ;;  %p1203_p10 = por %p1202_p9, %p1201_p8 }
  0x73   : > { %994 = vmatprep.subr.bf16.mxu0 %v1128_v7  ;;  %1031 = vmatprep.subr.bf16.mxu1 %v1128_v7  ;;  %v311_v47 = vadd.f32 %v1472_v22, %v284_v38  ;;  %v457_v49 = vmul.f32 %v441_v41, %v1468_v20  ;;  %v386_v53 = vadd.f32 %v370_v43, %v1472_v22  ;;  %v530_v55 = vunpack.c.h.bf16 %v1495_v36  ;;  %v1136_v57 = vld [vmem:[#allocation7 + $0x78] sm:$0xff]   ;;  %v1549_v43 = vld [vmem:[%s1450_s7 + $0xa8] sm:$0xff] }
  0x74   : > { %v384_v52 = vadd.f32 %v368_v42, %v1472_v22  ;;  %v459_v54 = vmul.f32 %v443_v45, %v1468_v20  ;;  %v329_v59 = vmax.f32 %v313_v48, 0.0  ;;  %v531_v61 = vunpack.c.l.bf16 %v1506_v46  ;;  %v1530_v7 = vld [vmem:[%s1450_s7 + $0x60] sm:$0xff]  ;;  %p1204_p1 = pnand %p1203_p10, %p1197_p7 }
  0x75   : > { %v327_v58 = vmax.f32 %v311_v47, 0.0  ;;  %v473_v60 = vadd.f32 %v457_v49, %v1472_v22  ;;  %v402_v63 = vmax.f32 %v386_v53, 0.0  ;;  %v532_v1 = vunpack.c.h.bf16 %v1506_v46  ;;  %v1137_v8 = vld [vmem:[#allocation7 + $0x38] sm:$0xff]  }
  0x76   : > { %995 = vmatpush3.bf16.msra.mxu0 %v1129_v9  ;;  %1039 = vmatpush3.bf16.msra.mxu1 %v1129_v9  ;;  %v400_v62 = vmax.f32 %v384_v52, 0.0  ;;  %v475_v0 = vadd.f32 %v459_v54, %v1472_v22  ;;  %v546_v4 = vmul.f32 %v530_v55, %v1468_v20  ;;  %v264_v5 = vunpack.c.l.bf16 %v1517_v56  ;;  %v1541_v27 = vld [vmem:[%s1450_s7 + $0xa0] sm:$0xff] }
  0x77   : > { %996 = vmatprep.subr.bf16.mxu0 %v1130_v10  ;;  %1032 = vmatprep.subr.bf16.mxu1 %v1130_v10  ;;  %v489_v3 = vmax.f32 %v473_v60, 0.0  ;;  %v265_v6 = vunpack.c.h.bf16 %v1517_v56  ;;  %v418_v10 = vadd.f32 %v402_v63, %v329_v59  ;;  %v548_v12 = vmul.f32 %v532_v1, %v1468_v20 }
  0x78   : > { %v416_v9 = vadd.f32 %v400_v62, %v327_v58  ;;  %v491_v11 = vmax.f32 %v475_v0, 0.0  ;;  %v267_v15 = vunpack.c.h.bf16 %v1524_v2  ;;  %v360_v42 = vunpack.c.h.bf16 %v1530_v7  ;;  %v1563_v62 = vld [vmem:[%s1450_s7 + $0xe8] sm:$0xff] }
  0x79   : > { %v292_v16 = vmul.f32 %v1468_v20, %v265_v6  ;;  %v564_v35 = vadd.f32 %v548_v12, %v1472_v22  ;;  %v361_v47 = vunpack.c.l.bf16 %v1538_v25  ;;  %v362_v48 = vunpack.c.h.bf16 %v1538_v25 }
  0x7a   : > { %997 = vmatpush3.bf16.msra.mxu0 %v1131_v13  ;;  %1040 = vmatpush3.bf16.msra.mxu1 %v1131_v13  ;;  %v562_v13 = vadd.f32 %v546_v4, %v1472_v22  ;;  %v507_v33 = vadd.f32 %v491_v11, %v418_v10  ;;  %v294_v39 = vmul.f32 %v1468_v20, %v267_v15  ;;  %v448_v49 = vunpack.c.l.bf16 %v1541_v27 }
  0x7b   : > { %998 = vmatprep.subr.bf16.mxu0 %v1132_v14  ;;  %1033 = vmatprep.subr.bf16.mxu1 %v1132_v14  ;;  %v266_v14 = vunpack.c.l.bf16 %v1524_v2  ;;  %v319_v41 = vadd.f32 %v1472_v22, %v292_v16  ;;  %v580_v45 = vmax.f32 %v564_v35, 0.0  ;;  %v376_v55 = vmul.f32 %v360_v42, %v1468_v20 }
  0x7c   : > { %v578_v38 = vmax.f32 %v562_v13, 0.0  ;;  %v321_v53 = vadd.f32 %v1472_v22, %v294_v39  ;;  %v378_v58 = vmul.f32 %v362_v48, %v1468_v20  ;;  %v449_v59 = vunpack.c.h.bf16 %v1541_v27 }
  0x7d   : > { %v335_v54 = vmax.f32 %v319_v41, 0.0  ;;  %v450_v60 = vunpack.c.l.bf16 %v1549_v43  ;;  %v392_v0 = vadd.f32 %v376_v55, %v1472_v22  ;;  %v451_v1 = vunpack.c.h.bf16 %v1549_v43  ;;  %v1643_v43 = vld [vmem:[%s1450_s7 + $0x18] sm:$0xff] }
  0x7e   : > { %999 = vmatpush3.bf16.msra.mxu0 %v1133_v31  ;;  %1041 = vmatpush3.bf16.msra.mxu1 %v1133_v31  ;;  %v505_v31 = vadd.f32 %v489_v3, %v416_v9  ;;  %v337_v63 = vmax.f32 %v321_v53, 0.0  ;;  %v394_v6 = vadd.f32 %v378_v58, %v1472_v22  ;;  %v539_v12 = vunpack.c.l.bf16 %v1563_v62 }
  0x7f   : > { %1000 = vmatprep.subr.bf16.mxu0 %v1134_v37  ;;  %1034 = vmatprep.subr.bf16.mxu1 %v1134_v37  ;;  %v359_v37 = vunpack.c.l.bf16 %v1530_v7  ;;  %v408_v10 = vmax.f32 %v392_v0, 0.0  ;;  %v467_v11 = vmul.f32 %v451_v1, %v1468_v20  ;;  %v540_v13 = vunpack.c.h.bf16 %v1563_v62 }
  0x80   : > { %v594_v52 = vadd.f32 %v578_v38, %v505_v31  ;;  %v410_v15 = vmax.f32 %v394_v6, 0.0  ;;  %v285_v41 = vmul.f32 %v1466_v19, %v258_v26  ;;  %v369_v26 = vmul.f32 %v353_v34, %v1466_v19 }
  0x81   : > { %v424_v35 = vadd.f32 %v408_v10, %v335_v54  ;;  %v483_v38 = vadd.f32 %v467_v11, %v1472_v22  ;;  %v556_v39 = vmul.f32 %v540_v13, %v1468_v20  ;;  %v367_v54 = vmul.f32 %v351_v32, %v1466_v19 }
  0x82   : > { %1001 = vmatpush3.bf16.msra.mxu0 %v1135_v51  ;;  %1042 = vmatpush3.bf16.msra.mxu1 %v1135_v51  ;;  %v1555_v51 = vld [vmem:[%s1450_s7 + $0xe0] sm:$0xff]  ;;  %v426_v42 = vadd.f32 %v410_v15, %v337_v63  ;;  %v456_v23 = vmul.f32 %v440_v40, %v1466_v19  ;;  %v458_v32 = vmul.f32 %v442_v44, %v1466_v19  ;;  %v263_v62 = vunpack.c.h.bf16 %v1643_v43 }
  0x83   : > { %1002 = vmatprep.subr.bf16.mxu0 %v1136_v57  ;;  %1035 = vmatprep.subr.bf16.mxu1 %v1136_v57  ;;  %v596_v57 = vadd.f32 %v580_v45, %v507_v33  ;;  %v537_v3 = vunpack.c.l.bf16 %v1555_v51  ;;  %v538_v9 = vunpack.c.h.bf16 %v1555_v51  ;;  %v283_v33 = vmul.f32 %v1466_v19, %v256_v24 }
  0x84   : > { %v499_v53 = vmax.f32 %v483_v38, 0.0  ;;  %v572_v17 = vadd.f32 %v556_v39, %v1472_v22  ;;  %v312_v24 = vadd.f32 %v1470_v21, %v285_v41  ;;  %v383_v0 = vadd.f32 %v367_v54, %v1470_v21  ;;  %v1653_v54 = vld [vmem:[%s1450_s7 + $0x58] sm:$0xff] }
  0x85   : > { %v610_v4 = vpack.c.bf16 %v596_v57, %v594_v52  ;;  %v554_v31 = vmul.f32 %v538_v9, %v1468_v20  ;;  %v310_v52 = vadd.f32 %v1470_v21, %v283_v33  ;;  %v545_v28 = vmul.f32 %v529_v50, %v1466_v19 }
  0x86   : > { %1003 = vmatpush3.bf16.msra.mxu0 %v1137_v8  ;;  %1043 = vmatpush3.bf16.msra.mxu1 %v1137_v8  ;;  %v465_v8 = vmul.f32 %v449_v59, %v1468_v20  ;;  %v515_v58 = vadd.f32 %v499_v53, %v426_v42  ;;  %v588_v59 = vmax.f32 %v572_v17, 0.0  ;;  %v328_v63 = vmax.f32 %v312_v24, 0.0  ;;  %v1650_v24 = vld [vmem:[%s1450_s7 + $0x50] sm:$0xff] }
  0x87   : > { %777 = vmatprep.mubr.bf16.mxu0 %v610_v4  ;;  %v570_v48 = vadd.f32 %v554_v31, %v1472_v22  ;;  %v326_v18 = vmax.f32 %v310_v52, 0.0  ;;  %v385_v4 = vadd.f32 %v369_v26, %v1470_v21  ;;  %v547_v34 = vmul.f32 %v531_v61, %v1466_v19 }
  0x88   : > { %v481_v16 = vadd.f32 %v465_v8, %v1472_v22  ;;  %v604_v6 = vadd.f32 %v588_v59, %v515_v58  ;;  %v399_v8 = vmax.f32 %v383_v0, 0.0  ;;  %v472_v10 = vadd.f32 %v456_v23, %v1470_v21  ;;  %v1660_v58 = vld [vmem:[%s1450_s7 + $0x90] sm:$0xff] }
  0x89   : > { %v586_v57 = vmax.f32 %v570_v48, 0.0  ;;  %v401_v9 = vmax.f32 %v385_v4, 0.0  ;;  %v474_v29 = vadd.f32 %v458_v32, %v1470_v21  ;;  %v291_v30 = vmul.f32 %v1466_v19, %v264_v5  ;;  %v1665_v4 = vld [vmem:[%s1450_s7 + $0x98] sm:$0xff] }
  0x8a   : > { %v497_v45 = vmax.f32 %v481_v16, 0.0  ;;  %v415_v44 = vadd.f32 %v399_v8, %v326_v18  ;;  %v561_v11 = vadd.f32 %v545_v28, %v1470_v21  ;;  %v563_v36 = vadd.f32 %v547_v34, %v1470_v21  ;;  %v1670_v28 = vld [vmem:[%s1450_s7 + $0xd0] sm:$0xff] }
  0x8b   : > { %v417_v50 = vadd.f32 %v401_v9, %v328_v63  ;;  %v488_v13 = vmax.f32 %v472_v10, 0.0  ;;  %v490_v46 = vmax.f32 %v474_v29, 0.0  ;;  %v293_v61 = vmul.f32 %v1466_v19, %v266_v14 }
  0x8c   : > { %v513_v55 = vadd.f32 %v497_v45, %v424_v35  ;;  %v577_v15 = vmax.f32 %v561_v11, 0.0  ;;  %v579_v16 = vmax.f32 %v563_v36, 0.0  ;;  %v318_v56 = vadd.f32 %v1470_v21, %v291_v30  ;;  %v1676_v30 = vld [vmem:[%s1450_s7 + $0xd8] sm:$0xff] }
  0x8d   : > { %v375_v5 = vmul.f32 %v359_v37, %v1466_v19  ;;  %v504_v31 = vadd.f32 %v488_v13, %v415_v44  ;;  %v506_v33 = vadd.f32 %v490_v46, %v417_v50  ;;  %v320_v35 = vadd.f32 %v1470_v21, %v293_v61  ;;  %v1634_v37 = vld [vmem:[%s1450_s7 + $0x10] sm:$0xff] }
  0x8e   : > { %v602_v1 = vadd.f32 %v586_v57, %v513_v55  ;;  %v377_v2 = vmul.f32 %v361_v47, %v1466_v19  ;;  %v334_v38 = vmax.f32 %v318_v56, 0.0  ;;  %v464_v39 = vmul.f32 %v448_v49, %v1466_v19 }
  0x8f   : > { %v391_v14 = vadd.f32 %v375_v5, %v1470_v21  ;;  %v466_v7 = vmul.f32 %v450_v60, %v1466_v19  ;;  %v593_v41 = vadd.f32 %v577_v15, %v504_v31  ;;  %v595_v42 = vadd.f32 %v579_v16, %v506_v33  ;;  %v1685_v15 = vld [vmem:[%s1450_s7 + $0x30] sm:$0xff]  ;;  %v1688_v16 = vld [vmem:[%s1450_s7 + $0x38] sm:$0xff] }
  0x90   : > { %v614_v40 = vpack.c.bf16 %v604_v6, %v602_v1  ;;  %v336_v45 = vmax.f32 %v320_v35, 0.0  ;;  %v393_v25 = vadd.f32 %v377_v2, %v1470_v21  ;;  %v480_v48 = vadd.f32 %v464_v39, %v1470_v21 }
  0x91   : > { %v407_v47 = vmax.f32 %v391_v14, 0.0  ;;  %v482_v52 = vadd.f32 %v466_v7, %v1470_v21  ;;  %v553_v27 = vmul.f32 %v537_v3, %v1466_v19  ;;  %v609_v49 = vpack.c.bf16 %v595_v42, %v593_v41 }
  0x92   : > { %793 = vmatprep.mubr.bf16.mxu1 %v614_v40  ;;  %v409_v60 = vmax.f32 %v393_v25, 0.0  ;;  %v555_v53 = vmul.f32 %v539_v12, %v1466_v19  ;;  %v261_v17 = vunpack.c.h.bf16 %v1634_v37  ;;  %v496_v57 = vmax.f32 %v480_v48, 0.0  ;;  %v1702_v25 = vld [vmem:[%s1450_s7 + $0x78] sm:$0xff] }
  0x93   : > { %v423_v55 = vadd.f32 %v407_v47, %v334_v38  ;;  %v498_v51 = vmax.f32 %v482_v52, 0.0  ;;  %v569_v3 = vadd.f32 %v553_v27, %v1470_v21  ;;  %778 = vmatmul.mubr.bf16.vlgmr.msra.gmra.mrb[0].mxu0 %v609_v49  ;;  %v356_v0 = vunpack.c.h.bf16 %v1650_v24 }
  0x94   : > { %v425_v18 = vadd.f32 %v409_v60, %v336_v45  ;;  %v571_v26 = vadd.f32 %v555_v53, %v1470_v21  ;;  %v288_v12 = vmul.f32 %v1468_v20, %v261_v17  ;;  %v358_v1 = vunpack.c.h.bf16 %v1653_v54  ;;  %v1699_v45 = vld [vmem:[%s1450_s7 + $0x70] sm:$0xff] }
  0x95   : > { %v512_v59 = vadd.f32 %v496_v57, %v423_v55  ;;  %v585_v63 = vmax.f32 %v569_v3, 0.0  ;;  %v290_v6 = vmul.f32 %v1468_v20, %v263_v62  ;;  %v372_v9 = vmul.f32 %v356_v0, %v1468_v20  ;;  %v1709_v55 = vld [vmem:[%s1450_s7 + $0xb0] sm:$0xff] }
  0x96   : > { %v514_v23 = vadd.f32 %v498_v51, %v425_v18  ;;  %v587_v32 = vmax.f32 %v571_v26, 0.0  ;;  %v315_v8 = vadd.f32 %v1472_v22, %v288_v12  ;;  %v374_v10 = vmul.f32 %v358_v1, %v1468_v20  ;;  %v1714_v26 = vld [vmem:[%s1450_s7 + $0xb8] sm:$0xff]  ;;  %v1719_v0 = vld [vmem:[%s1450_s7 + $0xf0] sm:$0xff] }
  0x97   : > { %v601_v34 = vadd.f32 %v585_v63, %v512_v59  ;;  %v445_v29 = vunpack.c.h.bf16 %v1660_v58  ;;  %v317_v44 = vadd.f32 %v1472_v22, %v290_v6  ;;  %v447_v36 = vunpack.c.h.bf16 %v1665_v4 }
  0x98   : > { %v603_v40 = vadd.f32 %v587_v32, %v514_v23  ;;  %v331_v11 = vmax.f32 %v315_v8, 0.0  ;;  %v388_v50 = vadd.f32 %v372_v9, %v1472_v22  ;;  %v390_v13 = vadd.f32 %v374_v10, %v1472_v22  ;;  %v1725_v8 = vld [vmem:[%s1450_s7 + $0xf8] sm:$0xff] }
  0x99   : > { %v461_v46 = vmul.f32 %v445_v29, %v1468_v20  ;;  %v534_v61 = vunpack.c.h.bf16 %v1670_v28  ;;  %v333_v5 = vmax.f32 %v317_v44, 0.0  ;;  %v463_v31 = vmul.f32 %v447_v36, %v1468_v20 }
  0x9a   : > { %v613_v56 = vpack.c.bf16 %v603_v40, %v601_v34  ;;  %v536_v33 = vunpack.c.h.bf16 %v1676_v30  ;;  %v404_v35 = vmax.f32 %v388_v50, 0.0  ;;  %v406_v2 = vmax.f32 %v390_v13, 0.0 }
  0x9b   : > { %v477_v38 = vadd.f32 %v461_v46, %v1472_v22  ;;  %v550_v14 = vmul.f32 %v534_v61, %v1468_v20  ;;  %v479_v39 = vadd.f32 %v463_v31, %v1472_v22  ;;  %v269_v41 = vunpack.c.h.bf16 %v1685_v15 }
  0x9c   : > { %794 = vmatmul.mubr.bf16.vlgmr.msra.gmra.mrb[0].mxu1 %v613_v56  ;;  %v552_v7 = vmul.f32 %v536_v33, %v1468_v20  ;;  %v271_v42 = vunpack.c.h.bf16 %v1688_v16  ;;  %v420_v47 = vadd.f32 %v404_v35, %v331_v11  ;;  %v422_v48 = vadd.f32 %v406_v2, %v333_v5 }
  0x9d   : > { %v493_v52 = vmax.f32 %v477_v38, 0.0  ;;  %v566_v27 = vadd.f32 %v550_v14, %v1472_v22  ;;  %v495_v49 = vmax.f32 %v479_v39, 0.0  ;;  %v296_v53 = vmul.f32 %v1468_v20, %v269_v41 }
  0x9e   : > { %v568_v60 = vadd.f32 %v552_v7, %v1472_v22  ;;  %v298_v17 = vmul.f32 %v1468_v20, %v271_v42  ;;  %v364_v3 = vunpack.c.h.bf16 %v1699_v45  ;;  %v366_v18 = vunpack.c.h.bf16 %v1702_v25 }
  0x9f   : > { %v509_v57 = vadd.f32 %v493_v52, %v420_v47  ;;  %v582_v51 = vmax.f32 %v566_v27, 0.0  ;;  %v511_v62 = vadd.f32 %v495_v49, %v422_v48  ;;  %v323_v59 = vadd.f32 %v1472_v22, %v296_v53 }
  0xa0   : > { %v584_v12 = vmax.f32 %v568_v60, 0.0  ;;  %v325_v63 = vadd.f32 %v1472_v22, %v298_v17  ;;  %v380_v23 = vmul.f32 %v364_v3, %v1468_v20  ;;  %v382_v32 = vmul.f32 %v366_v18, %v1468_v20 }
  0xa1   : > { %v598_v1 = vadd.f32 %v582_v51, %v509_v57  ;;  %v453_v6 = vunpack.c.h.bf16 %v1709_v55  ;;  %v339_v9 = vmax.f32 %v323_v59, 0.0  ;;  %v455_v29 = vunpack.c.h.bf16 %v1714_v26 }
  0xa2   : > { %v600_v34 = vadd.f32 %v584_v12, %v511_v62  ;;  %v341_v10 = vmax.f32 %v325_v63, 0.0  ;;  %v396_v40 = vadd.f32 %v380_v23, %v1472_v22  ;;  %v398_v44 = vadd.f32 %v382_v32, %v1472_v22 }
  0xa3   : > { %v469_v11 = vmul.f32 %v453_v6, %v1468_v20  ;;  %v542_v36 = vunpack.c.h.bf16 %v1719_v0  ;;  %v471_v13 = vmul.f32 %v455_v29, %v1468_v20  ;;  %v544_v46 = vunpack.c.h.bf16 %v1725_v8 }
  0xa4   : > { %v612_v50 = vpack.c.bf16 %v600_v34, %v598_v1  ;;  %v260_v61 = vunpack.c.l.bf16 %v1634_v37  ;;  %v412_v56 = vmax.f32 %v396_v40, 0.0  ;;  %v414_v5 = vmax.f32 %v398_v44, 0.0 }
  0xa5   : > { %v485_v31 = vadd.f32 %v469_v11, %v1472_v22  ;;  %v558_v33 = vmul.f32 %v542_v36, %v1468_v20  ;;  %v487_v35 = vadd.f32 %v471_v13, %v1472_v22  ;;  %v560_v2 = vmul.f32 %v544_v46, %v1468_v20 }
  0xa6   : > { %785 = vmatprep.mubr.bf16.mxu0 %v612_v50  ;;  %v262_v38 = vunpack.c.l.bf16 %v1643_v43  ;;  %v287_v14 = vmul.f32 %v1466_v19, %v260_v61  ;;  %v428_v39 = vadd.f32 %v412_v56, %v339_v9  ;;  %v430_v7 = vadd.f32 %v414_v5, %v341_v10 }
  0xa7   : > { %v501_v41 = vmax.f32 %v485_v31, 0.0  ;;  %v574_v37 = vadd.f32 %v558_v33, %v1472_v22  ;;  %v503_v42 = vmax.f32 %v487_v35, 0.0  ;;  %v576_v47 = vadd.f32 %v560_v2, %v1472_v22 }
  0xa8   : > { %v289_v48 = vmul.f32 %v1466_v19, %v262_v38  ;;  %v314_v52 = vadd.f32 %v1470_v21, %v287_v14  ;;  %v355_v20 = vunpack.c.l.bf16 %v1650_v24  ;;  %v357_v43 = vunpack.c.l.bf16 %v1653_v54 }
  0xa9   : > { %v517_v27 = vadd.f32 %v501_v41, %v428_v39  ;;  %v590_v49 = vmax.f32 %v574_v37, 0.0  ;;  %v519_v60 = vadd.f32 %v503_v42, %v430_v7  ;;  %v592_v53 = vmax.f32 %v576_v47, 0.0 }
  0xaa   : > { %v316_v17 = vadd.f32 %v1470_v21, %v289_v48  ;;  %v330_v57 = vmax.f32 %v314_v52, 0.0  ;;  %v371_v3 = vmul.f32 %v355_v20, %v1466_v19  ;;  %v373_v22 = vmul.f32 %v357_v43, %v1466_v19 }
  0xab   : > { %v606_v51 = vadd.f32 %v590_v49, %v517_v27  ;;  %v444_v18 = vunpack.c.l.bf16 %v1660_v58  ;;  %v608_v62 = vadd.f32 %v592_v53, %v519_v60  ;;  %v446_v59 = vunpack.c.l.bf16 %v1665_v4 }
  0xac   : > { %v332_v12 = vmax.f32 %v316_v17, 0.0  ;;  %v533_v24 = vunpack.c.l.bf16 %v1670_v28  ;;  %v387_v54 = vadd.f32 %v371_v3, %v1470_v21  ;;  %v389_v63 = vadd.f32 %v373_v22, %v1470_v21 }
  0xad   : > { %v460_v1 = vmul.f32 %v444_v18, %v1466_v19  ;;  %v535_v23 = vunpack.c.l.bf16 %v1676_v30  ;;  %v616_v32 = vpack.c.bf16 %v608_v62, %v606_v51  ;;  %v462_v6 = vmul.f32 %v446_v59, %v1466_v19 }
  0xae   : > { %v549_v34 = vmul.f32 %v533_v24, %v1466_v19  ;;  %v268_v58 = vunpack.c.l.bf16 %v1685_v15  ;;  %v403_v9 = vmax.f32 %v387_v54, 0.0  ;;  %v405_v10 = vmax.f32 %v389_v63, 0.0 }
  0xaf   : > { %v476_v4 = vadd.f32 %v460_v1, %v1470_v21  ;;  %v551_v28 = vmul.f32 %v535_v23, %v1466_v19  ;;  %801 = vmatprep.mubr.bf16.mxu1 %v616_v32  ;;  %v478_v29 = vadd.f32 %v462_v6, %v1470_v21  ;;  %v270_v30 = vunpack.c.l.bf16 %v1688_v16 }
  0xb0   : > { %v565_v40 = vadd.f32 %v549_v34, %v1470_v21  ;;  %v295_v44 = vmul.f32 %v1466_v19, %v268_v58  ;;  %v419_v11 = vadd.f32 %v403_v9, %v330_v57  ;;  %v421_v36 = vadd.f32 %v405_v10, %v332_v12 }
  0xb1   : > { %v492_v50 = vmax.f32 %v476_v4, 0.0  ;;  %v567_v15 = vadd.f32 %v551_v28, %v1470_v21  ;;  %v494_v13 = vmax.f32 %v478_v29, 0.0  ;;  %v297_v61 = vmul.f32 %v1466_v19, %v270_v30 }
  0xb2   : > { %v581_v46 = vmax.f32 %v565_v40, 0.0  ;;  %v322_v56 = vadd.f32 %v1470_v21, %v295_v44  ;;  %v363_v33 = vunpack.c.l.bf16 %v1699_v45  ;;  %v365_v35 = vunpack.c.l.bf16 %v1702_v25 }
  0xb3   : > { %v508_v5 = vadd.f32 %v492_v50, %v419_v11  ;;  %v583_v31 = vmax.f32 %v567_v15, 0.0  ;;  %v510_v16 = vadd.f32 %v494_v13, %v421_v36  ;;  %v324_v2 = vadd.f32 %v1470_v21, %v297_v61 }
  0xb4   : > { %v338_v38 = vmax.f32 %v322_v56, 0.0  ;;  %v452_v14 = vunpack.c.l.bf16 %v1709_v55  ;;  %v379_v7 = vmul.f32 %v363_v33, %v1466_v19  ;;  %v381_v41 = vmul.f32 %v365_v35, %v1466_v19 }
  0xb5   : > { %v597_v39 = vadd.f32 %v581_v46, %v508_v5  ;;  %v454_v37 = vunpack.c.l.bf16 %v1714_v26  ;;  %v599_v42 = vadd.f32 %v583_v31, %v510_v16  ;;  %v340_v47 = vmax.f32 %v324_v2, 0.0 }
  0xb6   : > { %v468_v48 = vmul.f32 %v452_v14, %v1466_v19  ;;  %v541_v45 = vunpack.c.l.bf16 %v1719_v0  ;;  %v395_v25 = vadd.f32 %v379_v7, %v1470_v21  ;;  %v397_v52 = vadd.f32 %v381_v41, %v1470_v21 }
  0xb7   : > { %v470_v27 = vmul.f32 %v454_v37, %v1466_v19  ;;  %v543_v55 = vunpack.c.l.bf16 %v1725_v8  ;;  %v611_v49 = vpack.c.bf16 %v599_v42, %v597_v39 }
  0xb8   : > { %v484_v20 = vadd.f32 %v468_v48, %v1470_v21  ;;  %v557_v43 = vmul.f32 %v541_v45, %v1466_v19  ;;  %v411_v26 = vmax.f32 %v395_v25, 0.0  ;;  %v413_v60 = vmax.f32 %v397_v52, 0.0 }
  0xb9   : > { %v486_v53 = vadd.f32 %v470_v27, %v1470_v21  ;;  %v559_v17 = vmul.f32 %v543_v55, %v1466_v19  ;;  %786 = vmatmul.mubr.bf16.gmra.mrb[4].mxu0 %v611_v49 }
  0xba   : > { %v500_v0 = vmax.f32 %v484_v20, 0.0  ;;  %v573_v57 = vadd.f32 %v557_v43, %v1470_v21  ;;  %v427_v51 = vadd.f32 %v411_v26, %v338_v38  ;;  %v429_v3 = vadd.f32 %v413_v60, %v340_v47 }
  0xbb   : > { %v502_v22 = vmax.f32 %v486_v53, 0.0  ;;  %v575_v8 = vadd.f32 %v559_v17, %v1470_v21 }
  0xbc   : > { %v589_v18 = vmax.f32 %v573_v57, 0.0  ;;  %v516_v62 = vadd.f32 %v500_v0, %v427_v51 }
  0xbd   : > { %v518_v12 = vadd.f32 %v502_v22, %v429_v3  ;;  %v591_v59 = vmax.f32 %v575_v8, 0.0 }
  0xbe   : > { %v605_v24 = vadd.f32 %v589_v18, %v516_v62 }
  0xbf   : > { %v607_v54 = vadd.f32 %v591_v59, %v518_v12 }
  0xc1   : > { %v615_v63 = vpack.c.bf16 %v607_v54, %v605_v24 }
  0xc3   : > { %802 = vmatmul.mubr.bf16.gmra.mrb[4].mxu1 %v615_v63 }
 0x166   : > { %v1004_v19 = vpop.f32.mrb[0].mxu0 }
 0x167   : > { %v1005_v1 = vpop.f32.mrb[1].mxu0 }
 0x168   : > { %v1006_v23 = vadd.f32 %v1005_v1, %v1004_v19  ;;  %v1007_v32 = vpop.f32.mrb[2].mxu0 }
 0x169   : > { %v1008_v6 = vpop.f32.mrb[3].mxu0 }
 0x16a   : > { %810 = vst [vmem:[%s1789_s23] sm:$0xff] %v1006_v23  ;;  %v1009_v21 = vadd.f32 %v1008_v6, %v1007_v32 }
 0x16c   : > { %811 = vst [vmem:[%s1789_s23 + $0x8] sm:$0xff] %v1009_v21 }
 0x16f   : > { %v1016_v34 = vpop.f32.mrb[0].mxu1 }
 0x170   : > { %v1017_v58 = vpop.f32.mrb[1].mxu1 }
 0x171   : > { %v1018_v9 = vadd.f32 %v1017_v58, %v1016_v34  ;;  %v1019_v10 = vpop.f32.mrb[2].mxu1 }
 0x172   : > { %v1020_v4 = vpop.f32.mrb[3].mxu1 }
 0x173   : > { %814 = vst [vmem:[%s1789_s23 + $0x20] sm:$0xff] %v1018_v9  ;;  %v1021_v28 = vadd.f32 %v1020_v4, %v1019_v10 }
 0x175   : > { %815 = vst [vmem:[%s1789_s23 + $0x28] sm:$0xff] %v1021_v28 }
 0x18c   : > { %v1010_v29 = vpop.f32.mrb[4].mxu0 }
 0x18d   : > { %v1011_v40 = vpop.f32.mrb[5].mxu0 }
 0x18e   : > { %v1012_v30 = vadd.f32 %v1011_v40, %v1010_v29  ;;  %v1013_v44 = vpop.f32.mrb[6].mxu0 }
 0x18f   : > { %v1014_v11 = vpop.f32.mrb[7].mxu0 }
 0x190   : > { %812 = vst [vmem:[%s1789_s23 + $0x10] sm:$0xff] %v1012_v30  ;;  %v1015_v36 = vadd.f32 %v1014_v11, %v1013_v44 }
 0x192   : > { %813 = vst [vmem:[%s1789_s23 + $0x18] sm:$0xff] %v1015_v36 }
 0x196   : > { %v1022_v50 = vpop.f32.mrb[4].mxu1 }
 0x197   : > { %v1023_v15 = vpop.f32.mrb[5].mxu1 }
 0x198   : > { %v1024_v13 = vadd.f32 %v1023_v15, %v1022_v50  ;;  %v1025_v46 = vpop.f32.mrb[6].mxu1 }
 0x199   : > { %v1026_v61 = vpop.f32.mrb[7].mxu1 }
 0x19a   : > { %816 = vst [vmem:[%s1789_s23 + $0x30] sm:$0xff] %v1024_v13  ;;  %v1027_v56 = vadd.f32 %v1026_v61, %v1025_v46 }
 0x19c   : > { %817 = vst [vmem:[%s1789_s23 + $0x38] sm:$0xff] %v1027_v56 }
 0x19d   : > { %1207 = shalt.err (!%p1204_p1)
}
 0x19e   : > { %s1208_s27 = scalar_lea.hbm %s1804_s28, 1024  ;;  %s1212_s30 = scalar_lea.hbm %s1853_s3, 2048 }
 0x19f   : > { %p1209_p3 = scmp.ne.s32.totalorder %s1804_s28, %s1208_s27  ;;  %p1213_p11 = scmp.lt.u32.totalorder %s1804_s28, %s1853_s3 }
 0x1a0   : > { %p1214_p5 = scmp.lt.u32.totalorder %s1212_s30, %s1208_s27  ;;  %p1216_p2 = scmp.lt.u32.totalorder %s1208_s27, %s1804_s28 }
 0x1a1   : > { %p1210_p0 = pnand %p1209_p3, %p1870_p13 }
 0x1a2   : > { %p1215_p12 = por %p1214_p5, %p1213_p11 }
 0x1a3   : > { %p1211_p6 = pneg %p1210_p0 }
 0x1a4   : > { %p1217_p7 = por %p1216_p2, %p1215_p12 }
 0x1a6   : > { %p1218_p8 = pnand %p1217_p7, %p1211_p6 }
 0x1a8   : > { %1221 = shalt.err (!%p1218_p8)
}
 0x1a9   : > { %s1276_s22 = smov 128   ;;  %s1277_s23 = smov 8  }
 0x1aa   : > { %1061 = dma.vmem_to_hbm [thread:$0]  (%p1870_p13), %s1799_s26, 1024, %s1804_s28, %s819_s10, %s1276_s22, %s1276_s22, %s1277_s23  }
 0x1ab PF: > { %s847_s20 = sand.u32 1, %s1252_s12   ;;  %p1871_p9 = scmp.ne.s32.totalorder %s1862_s25, 0 }
 0x1ac   : > { %s848_s6 = scalar_lea.sflag [#allocation4], %s847_s20 }
 0x1ad   : > { %p1071_p10 = pnand %p928_p4, %p1871_p9 }
 0x1af   : > { %1247 = dma.done.wait (!%p1071_p10), %s848_s6, 1024  }
 0x1b0   : > { %1249 = vsyncadd (!%p1071_p10), %s848_s6, 4294966272  ;;  %p17_p1 = scmp.ge.s32.totalorder %s1323_s18, 4   ;;  %s1872_s12 = smov %s1256_s13 }
 0x1b1   : > { %s1873_s13 = smov %s1260_s14  ;;  %s1874_s14 = smov %s1335_s21 }
 0x1b2   : > { %s1875_s15 = smov %s1323_s18  ;;  %19 = sbr.rel (!%p17_p1) target bundleno = 6 (0x6), region = 94 }
 0x1b9   :  { %853 = vsyncpa [#allocation3], 1 }
 0x1ba   :  { %855 = vsyncpa [#allocation3 + $0x1], 1 }
 0x1bb   :  { %856 = vsyncpa [#allocation6], 1 }
 0x1bc   :  { %857 = vsyncpa [#allocation4], 1 }
 0x1bd   :  { %859 = vsyncpa [#allocation4 + $0x1], 1 }

</bundles_post_ra>
